<compile_context>
chip_gen: v5e
topology: v5e:2x2
jax: 0.10.0
libtpu: 0.0.40
codegen_flags: <defaults>
</compile_context>

<pallas_src>
import functools

import jax
import jax.numpy as jnp
import numpy as np
from jax import lax
from jax.experimental import pallas as pl
from jax.experimental.pallas import tpu as pltpu


def _make_kernel(seq_len: int, batch_chunk: int, fc_layers: int, unroll: int):
    """Build a Pallas kernel closed over static seq_len / batch_chunk / fc_layers."""

    def kernel(x_ref, wx_ref, bx_ref, wh_ref, bh_ref, *rest):
        # rest = [w_fc0, b_fc0, ..., w_fc{L-1}, b_fc{L-1}, w_out, b_out,
        #         out_ref, h_scratch]
        *head_refs, out_ref, h_ref = rest

        wx = wx_ref[...]                      # (inDim, H)
        wh = wh_ref[...]                      # (H, H)
        b_comb = bx_ref[...] + bh_ref[...]    # (1, H)  hoisted bias sum
        hidden = wh.shape[0]

        # ---- hoisted input projection: one (T*BC, inDim)@(inDim, H) matmul ---
        h_ref[...] = (
            jnp.dot(x_ref[0], wx, preferred_element_type=jnp.float32) + b_comb
        )                                      # h_ref now holds xproj (T*BC, H)

        # ---- serial recurrence: only dot(h, Wh) -> tanh on the serial chain.
        # The next timestep's xproj row is prefetched one iteration ahead
        # (it has no dependence on h), so its load latency is hidden.
        def step(t, carry):
            h_prev, xp = carry
            h_new = jnp.tanh(
                xp + jnp.dot(h_prev, wh, preferred_element_type=jnp.float32))
            row = pl.multiple_of(t * batch_chunk, batch_chunk)   # sublane-aligned
            h_ref[pl.ds(row, batch_chunk), :] = h_new            # overwrite xproj_t
            nxt = jnp.where(t + 1 < seq_len, t + 1, 0)           # wrap: dummy load
            nrow = pl.multiple_of(nxt * batch_chunk, batch_chunk)
            xp_next = h_ref[pl.ds(nrow, batch_chunk), :]
            return h_new, xp_next

        h0 = jnp.full((batch_chunk, hidden), -1.0, dtype=jnp.float32)
        xp0 = h_ref[pl.ds(0, batch_chunk), :]
        lax.fori_loop(0, seq_len, step, (h0, xp0), unroll=unroll)

        # ---- MLP head, batched over all T*BC hidden states (off serial path) -
        y = h_ref[...]                                           # (T*BC, H)
        for i in range(fc_layers):
            w = head_refs[2 * i][...]
            b = head_refs[2 * i + 1][...]
            y = jnp.tanh(jnp.dot(y, w, preferred_element_type=jnp.float32) + b)
        w_out = head_refs[2 * fc_layers][...]                    # (H, out_pad)
        b_out = head_refs[2 * fc_layers + 1][...]
        y = jnp.dot(y, w_out, preferred_element_type=jnp.float32) + b_out

        out_ref[0] = y.astype(out_ref.dtype)   # unmasked 128-lane slab store

    return kernel


def _round_up(v: int, m: int) -> int:
    return ((v + m - 1) // m) * m


def _pick_batch_chunk(bp: int, seq_len: int, in_dim: int, hidden_dim: int,
                      out_pad: int) -> int:
    """Rows-per-block so the pipelined per-block resident set stays ~8 MiB."""
    bytes_per_row = 4 * (2 * in_dim + hidden_dim + 2 * out_pad)  # x/out 2-buffered
    max_rows = max(8 * seq_len, (8 << 20) // bytes_per_row)
    bc = max(8, (max_rows // seq_len // 8) * 8)
    return min(bc, bp)


def sequence_forecaster_forward(x, params, *, in_dim, hidden_dim, fc_layers, out_dim):
    """x: (B, T, inDim) float32 -> (B, T, outDim) float32."""
    b, t = x.shape[0], x.shape[1]
    x = x.reshape(b, t, in_dim)                              # x.view(...)

    out_pad = _round_up(max(out_dim, 128), 128)              # lane-dense output

    # Batch padded to sublane multiple, then to a multiple of the batch chunk.
    bp = _round_up(max(b, 8), 8)
    bc = _pick_batch_chunk(bp, t, in_dim, hidden_dim, out_pad)
    bp = _round_up(bp, bc)
    nblocks = bp // bc

    # NOTE: at large B*T these wrapper-side transposes/pads are extra HBM
    # passes; keep activations time-major upstream to avoid them.
    x_tm = jnp.transpose(x, (1, 0, 2))                       # (T, B, inDim)
    if bp != b:
        x_tm = jnp.pad(x_tm, ((0, 0), (0, bp - b), (0, 0)))
    x_blk = jnp.transpose(x_tm.reshape(t, nblocks, bc, in_dim),
                          (1, 0, 2, 3)).reshape(nblocks, t * bc, in_dim)

    # Lane-dense head: zero-pad the final Linear's output columns to out_pad.
    w_out = jnp.pad(params["w_out"], ((0, 0), (0, out_pad - out_dim)))
    b_out = jnp.pad(params["b_out"], ((0, 0), (0, out_pad - out_dim)))

    flat_params = [params["wx"], params["bx"], params["wh"], params["bh"]]
    for i in range(fc_layers):
        flat_params += [params[f"w_fc{i}"], params[f"b_fc{i}"]]
    flat_params += [w_out, b_out]

    # VMEM budget from the actual resident set (+ pipeline double buffers),
    # clamped well under v7x's 64 MiB physical VMEM.
    param_bytes = sum(int(np.prod(p.shape)) * 4 for p in flat_params)
    block_io_bytes = 2 * t * bc * (in_dim + out_pad) * 4     # x/out double-buffered
    scratch_bytes = t * bc * hidden_dim * 4
    resident = param_bytes + block_io_bytes + scratch_bytes
    vmem_limit = int(min(max(2 * resident, 16 << 20), 64 << 20))

    unroll = min(t, 8)                                       # bounded unroll

    x_spec = pl.BlockSpec((1, t * bc, in_dim), lambda c: (c, 0, 0))
    param_specs = [pl.BlockSpec(p.shape, lambda c: (0, 0)) for p in flat_params]
    out_spec = pl.BlockSpec((1, t * bc, out_pad), lambda c: (c, 0, 0))

    out_blk = pl.pallas_call(
        _make_kernel(t, bc, fc_layers, unroll),
        out_shape=jax.ShapeDtypeStruct((nblocks, t * bc, out_pad), jnp.float32),
        grid=(nblocks,),
        in_specs=[x_spec] + param_specs,
        out_specs=out_spec,
        scratch_shapes=[pltpu.VMEM((t * bc, hidden_dim), jnp.float32)],
        compiler_params=pltpu.CompilerParams(
            dimension_semantics=("parallel",),
            vmem_limit_bytes=vmem_limit),
    )(x_blk, *flat_params)

    out = jnp.transpose(out_blk.reshape(nblocks, t, bc, out_pad),
                        (1, 0, 2, 3)).reshape(t, bp, out_pad)
    out = out[:, :b, :out_dim]                               # drop batch/lane pad
    return jnp.transpose(out, (1, 0, 2))                     # (B, T, outDim)


def _reference_forward(x, params, *, in_dim, hidden_dim, fc_layers, out_dim):
    """Pure-JAX reference (mirrors the PyTorch forward exactly)."""
    b, t = x.shape[0], x.shape[1]
    x = x.reshape(b, t, in_dim).transpose(1, 0, 2)
    h = jnp.full((b, hidden_dim), -1.0, jnp.float32)
    outs = []
    for step in range(t):
        h = jnp.tanh(x[step] @ params["wx"] + params["bx"] +
                     h @ params["wh"] + params["bh"])
        y = h
        for i in range(fc_layers):
            y = jnp.tanh(y @ params[f"w_fc{i}"] + params[f"b_fc{i}"])
        y = y @ params["w_out"] + params["b_out"]
        outs.append(y)
    return jnp.stack(outs, axis=0).transpose(1, 0, 2)


def init_params(key, in_dim, hidden_dim, fc_layers, out_dim):
    """Deterministic synthetic parameters; weights stored as (in, out)."""
    params = {}

    def lin(k, fan_in, fan_out):
        kw, kb = jax.random.split(k)
        bound = 1.0 / np.sqrt(fan_in)
        w = jax.random.uniform(kw, (fan_in, fan_out), jnp.float32, -bound, bound)
        b = jax.random.uniform(kb, (1, fan_out), jnp.float32, -bound, bound)
        return w, b

    keys = jax.random.split(key, fc_layers + 3)
    params["wx"], params["bx"] = lin(keys[0], in_dim, hidden_dim)
    params["wh"], params["bh"] = lin(keys[1], hidden_dim, hidden_dim)
    for i in range(fc_layers):
        params[f"w_fc{i}"], params[f"b_fc{i}"] = lin(keys[2 + i], hidden_dim, hidden_dim)
    params["w_out"], params["b_out"] = lin(keys[-1], hidden_dim, out_dim)
    return params


if __name__ == "__main__":
    # Small shapes consistent with the module: batch=2, seq=8, inDim=4,
    # hidenDim=32, fc_layers=2, outDim=4.
    B, T, IN_DIM, HIDDEN, FC_LAYERS, OUT_DIM = 2, 8, 4, 32, 2, 4

    key = jax.random.PRNGKey(0)
    kx, kp = jax.random.split(key)
    x = jax.random.normal(kx, (B, T, IN_DIM), dtype=jnp.float32)
    params = init_params(kp, IN_DIM, HIDDEN, FC_LAYERS, OUT_DIM)

    fwd = functools.partial(sequence_forecaster_forward,
                            in_dim=IN_DIM, hidden_dim=HIDDEN,
                            fc_layers=FC_LAYERS, out_dim=OUT_DIM)
    out = jax.jit(fwd)(x, params)
    out = jax.block_until_ready(out)

    ref = _reference_forward(x, params, in_dim=IN_DIM, hidden_dim=HIDDEN,
                             fc_layers=FC_LAYERS, out_dim=OUT_DIM)
    assert out.shape == (B, T, OUT_DIM), out.shape
    np.testing.assert_allclose(np.asarray(out), np.asarray(ref),
                               rtol=1e-5, atol=1e-5)
    print("KERNEL_OK")
</pallas_src>

<mosaic_0001>
module attributes {stable_mosaic.version = 11 : i64} {
  func.func @kernel(%arg0: i32, %arg1: memref<1x64x4xf32, #tpu.memory_space<vmem>>, %arg2: memref<4x32xf32, #tpu.memory_space<vmem>>, %arg3: memref<1x32xf32, #tpu.memory_space<vmem>>, %arg4: memref<32x32xf32, #tpu.memory_space<vmem>>, %arg5: memref<1x32xf32, #tpu.memory_space<vmem>>, %arg6: memref<32x32xf32, #tpu.memory_space<vmem>>, %arg7: memref<1x32xf32, #tpu.memory_space<vmem>>, %arg8: memref<32x32xf32, #tpu.memory_space<vmem>>, %arg9: memref<1x32xf32, #tpu.memory_space<vmem>>, %arg10: memref<32x128xf32, #tpu.memory_space<vmem>>, %arg11: memref<1x128xf32, #tpu.memory_space<vmem>>, %arg12: memref<1x64x128xf32, #tpu.memory_space<vmem>>, %arg13: memref<64x32xf32, #tpu.memory_space<vmem>>) attributes {dimension_semantics = [#tpu.dimension_semantics<parallel>], iteration_bounds = array<i64: 1>, scalar_prefetch = 0 : i64, scratch_operands = 1 : i64, tpu.core_type = #tpu.core_type<tc>, window_params = [{transform_indices = @transform_0, window_bounds = array<i64: 1, 64, 4>}, {pipeline_mode = #tpu.pipeline_mode<synchronous>, transform_indices = @transform_1, window_bounds = array<i64: 4, 32>}, {pipeline_mode = #tpu.pipeline_mode<synchronous>, transform_indices = @transform_2, window_bounds = array<i64: 1, 32>}, {pipeline_mode = #tpu.pipeline_mode<synchronous>, transform_indices = @transform_3, window_bounds = array<i64: 32, 32>}, {pipeline_mode = #tpu.pipeline_mode<synchronous>, transform_indices = @transform_4, window_bounds = array<i64: 1, 32>}, {pipeline_mode = #tpu.pipeline_mode<synchronous>, transform_indices = @transform_5, window_bounds = array<i64: 32, 32>}, {pipeline_mode = #tpu.pipeline_mode<synchronous>, transform_indices = @transform_6, window_bounds = array<i64: 1, 32>}, {pipeline_mode = #tpu.pipeline_mode<synchronous>, transform_indices = @transform_7, window_bounds = array<i64: 32, 32>}, {pipeline_mode = #tpu.pipeline_mode<synchronous>, transform_indices = @transform_8, window_bounds = array<i64: 1, 32>}, {pipeline_mode = #tpu.pipeline_mode<synchronous>, transform_indices = @transform_9, window_bounds = array<i64: 32, 128>}, {pipeline_mode = #tpu.pipeline_mode<synchronous>, transform_indices = @transform_10, window_bounds = array<i64: 1, 128>}, {transform_indices = @transform_11, window_bounds = array<i64: 1, 64, 128>}]} {
    %c0 = arith.constant 0 : index
    %c0_0 = arith.constant 0 : index
    %0 = vector.load %arg2[%c0, %c0_0] : memref<4x32xf32, #tpu.memory_space<vmem>>, vector<4x32xf32>
    %c0_1 = arith.constant 0 : index
    %c0_2 = arith.constant 0 : index
    %1 = vector.load %arg4[%c0_1, %c0_2] : memref<32x32xf32, #tpu.memory_space<vmem>>, vector<32x32xf32>
    %c0_3 = arith.constant 0 : index
    %c0_4 = arith.constant 0 : index
    %2 = vector.load %arg3[%c0_3, %c0_4] : memref<1x32xf32, #tpu.memory_space<vmem>>, vector<1x32xf32>
    %c0_5 = arith.constant 0 : index
    %c0_6 = arith.constant 0 : index
    %3 = vector.load %arg5[%c0_5, %c0_6] : memref<1x32xf32, #tpu.memory_space<vmem>>, vector<1x32xf32>
    %4 = arith.addf %2, %3 : vector<1x32xf32>
    %c0_7 = arith.constant 0 : index
    %c0_8 = arith.constant 0 : index
    %c0_9 = arith.constant 0 : index
    %5 = vector.load %arg1[%c0_7, %c0_8, %c0_9] : memref<1x64x4xf32, #tpu.memory_space<vmem>>, vector<1x64x4xf32>
    %6 = vector.shape_cast %5 : vector<1x64x4xf32> to vector<64x4xf32>
    %cst = arith.constant dense<0.000000e+00> : vector<64x32xf32>
    %7 = tpu.matmul %6, %0, %cst {dimension_numbers = #tpu.dot_dimension_numbers<[1], [0], [0], [1], [0, 0, 1, 1], [], []>} : vector<64x4xf32>, vector<4x32xf32>, vector<64x32xf32> -> vector<64x32xf32>
    %8 = vector.broadcast %4 : vector<1x32xf32> to vector<64x32xf32>
    %9 = arith.addf %7, %8 : vector<64x32xf32>
    %c0_10 = arith.constant 0 : index
    %c0_11 = arith.constant 0 : index
    %10 = vector.load %arg13[%c0_10, %c0_11] : memref<64x32xf32, #tpu.memory_space<vmem>>, vector<64x32xf32>
    tpu.vector_store %arg13[%c0_10, %c0_11], %9 {strides = array<i32>} : memref<64x32xf32, #tpu.memory_space<vmem>>, vector<64x32xf32>,
    %cst_12 = arith.constant -1.000000e+00 : f32
    %11 = vector.broadcast %cst_12 : f32 to vector<8x32xf32>
    %c0_13 = arith.constant 0 : index
    %c0_14 = arith.constant 0 : index
    %12 = vector.load %arg13[%c0_13, %c0_14] : memref<64x32xf32, #tpu.memory_space<vmem>>, vector<8x32xf32>
    %c0_i32 = arith.constant 0 : i32
    %cst_15 = arith.constant dense<0.000000e+00> : vector<8x32xf32>
    %13 = tpu.matmul %11, %1, %cst_15 {dimension_numbers = #tpu.dot_dimension_numbers<[1], [0], [0], [1], [0, 0, 1, 1], [], []>} : vector<8x32xf32>, vector<32x32xf32>, vector<8x32xf32> -> vector<8x32xf32>
    %14 = arith.addf %12, %13 : vector<8x32xf32>
    %15 = math.tanh %14 : vector<8x32xf32>
    %c8_i32 = arith.constant 8 : i32
    %16 = arith.muli %c0_i32, %c8_i32 : i32
    %17 = tpu.assume_multiple %16, 8 : i32
    %18 = arith.index_cast %17 : i32 to index
    %c0_16 = arith.constant 0 : index
    %19 = vector.load %arg13[%18, %c0_16] : memref<64x32xf32, #tpu.memory_space<vmem>>, vector<8x32xf32>
    tpu.vector_store %arg13[%18, %c0_16], %15 {strides = array<i32>} : memref<64x32xf32, #tpu.memory_space<vmem>>, vector<8x32xf32>,
    %c1_i32 = arith.constant 1 : i32
    %20 = arith.addi %c0_i32, %c1_i32 : i32
    %c8_i32_17 = arith.constant 8 : i32
    %21 = arith.cmpi slt, %20, %c8_i32_17 : i32
    %c1_i32_18 = arith.constant 1 : i32
    %22 = arith.addi %c0_i32, %c1_i32_18 : i32
    %c0_i32_19 = arith.constant 0 : i32
    %23 = arith.select %21, %22, %c0_i32_19 : i32
    %c8_i32_20 = arith.constant 8 : i32
    %24 = arith.muli %23, %c8_i32_20 : i32
    %25 = tpu.assume_multiple %24, 8 : i32
    %26 = arith.index_cast %25 : i32 to index
    %c0_21 = arith.constant 0 : index
    %27 = vector.load %arg13[%26, %c0_21] : memref<64x32xf32, #tpu.memory_space<vmem>>, vector<8x32xf32>
    %c1_i32_22 = arith.constant 1 : i32
    %cst_23 = arith.constant dense<0.000000e+00> : vector<8x32xf32>
    %28 = tpu.matmul %15, %1, %cst_23 {dimension_numbers = #tpu.dot_dimension_numbers<[1], [0], [0], [1], [0, 0, 1, 1], [], []>} : vector<8x32xf32>, vector<32x32xf32>, vector<8x32xf32> -> vector<8x32xf32>
    %29 = arith.addf %27, %28 : vector<8x32xf32>
    %30 = math.tanh %29 : vector<8x32xf32>
    %c8_i32_24 = arith.constant 8 : i32
    %31 = arith.muli %c1_i32_22, %c8_i32_24 : i32
    %32 = tpu.assume_multiple %31, 8 : i32
    %33 = arith.index_cast %32 : i32 to index
    %c0_25 = arith.constant 0 : index
    %34 = vector.load %arg13[%33, %c0_25] : memref<64x32xf32, #tpu.memory_space<vmem>>, vector<8x32xf32>
    tpu.vector_store %arg13[%33, %c0_25], %30 {strides = array<i32>} : memref<64x32xf32, #tpu.memory_space<vmem>>, vector<8x32xf32>,
    %c1_i32_26 = arith.constant 1 : i32
    %35 = arith.addi %c1_i32_22, %c1_i32_26 : i32
    %c8_i32_27 = arith.constant 8 : i32
    %36 = arith.cmpi slt, %35, %c8_i32_27 : i32
    %c1_i32_28 = arith.constant 1 : i32
    %37 = arith.addi %c1_i32_22, %c1_i32_28 : i32
    %c0_i32_29 = arith.constant 0 : i32
    %38 = arith.select %36, %37, %c0_i32_29 : i32
    %c8_i32_30 = arith.constant 8 : i32
    %39 = arith.muli %38, %c8_i32_30 : i32
    %40 = tpu.assume_multiple %39, 8 : i32
    %41 = arith.index_cast %40 : i32 to index
    %c0_31 = arith.constant 0 : index
    %42 = vector.load %arg13[%41, %c0_31] : memref<64x32xf32, #tpu.memory_space<vmem>>, vector<8x32xf32>
    %c2_i32 = arith.constant 2 : i32
    %cst_32 = arith.constant dense<0.000000e+00> : vector<8x32xf32>
    %43 = tpu.matmul %30, %1, %cst_32 {dimension_numbers = #tpu.dot_dimension_numbers<[1], [0], [0], [1], [0, 0, 1, 1], [], []>} : vector<8x32xf32>, vector<32x32xf32>, vector<8x32xf32> -> vector<8x32xf32>
    %44 = arith.addf %42, %43 : vector<8x32xf32>
    %45 = math.tanh %44 : vector<8x32xf32>
    %c8_i32_33 = arith.constant 8 : i32
    %46 = arith.muli %c2_i32, %c8_i32_33 : i32
    %47 = tpu.assume_multiple %46, 8 : i32
    %48 = arith.index_cast %47 : i32 to index
    %c0_34 = arith.constant 0 : index
    %49 = vector.load %arg13[%48, %c0_34] : memref<64x32xf32, #tpu.memory_space<vmem>>, vector<8x32xf32>
    tpu.vector_store %arg13[%48, %c0_34], %45 {strides = array<i32>} : memref<64x32xf32, #tpu.memory_space<vmem>>, vector<8x32xf32>,
    %c1_i32_35 = arith.constant 1 : i32
    %50 = arith.addi %c2_i32, %c1_i32_35 : i32
    %c8_i32_36 = arith.constant 8 : i32
    %51 = arith.cmpi slt, %50, %c8_i32_36 : i32
    %c1_i32_37 = arith.constant 1 : i32
    %52 = arith.addi %c2_i32, %c1_i32_37 : i32
    %c0_i32_38 = arith.constant 0 : i32
    %53 = arith.select %51, %52, %c0_i32_38 : i32
    %c8_i32_39 = arith.constant 8 : i32
    %54 = arith.muli %53, %c8_i32_39 : i32
    %55 = tpu.assume_multiple %54, 8 : i32
    %56 = arith.index_cast %55 : i32 to index
    %c0_40 = arith.constant 0 : index
    %57 = vector.load %arg13[%56, %c0_40] : memref<64x32xf32, #tpu.memory_space<vmem>>, vector<8x32xf32>
    %c3_i32 = arith.constant 3 : i32
    %cst_41 = arith.constant dense<0.000000e+00> : vector<8x32xf32>
    %58 = tpu.matmul %45, %1, %cst_41 {dimension_numbers = #tpu.dot_dimension_numbers<[1], [0], [0], [1], [0, 0, 1, 1], [], []>} : vector<8x32xf32>, vector<32x32xf32>, vector<8x32xf32> -> vector<8x32xf32>
    %59 = arith.addf %57, %58 : vector<8x32xf32>
    %60 = math.tanh %59 : vector<8x32xf32>
    %c8_i32_42 = arith.constant 8 : i32
    %61 = arith.muli %c3_i32, %c8_i32_42 : i32
    %62 = tpu.assume_multiple %61, 8 : i32
    %63 = arith.index_cast %62 : i32 to index
    %c0_43 = arith.constant 0 : index
    %64 = vector.load %arg13[%63, %c0_43] : memref<64x32xf32, #tpu.memory_space<vmem>>, vector<8x32xf32>
    tpu.vector_store %arg13[%63, %c0_43], %60 {strides = array<i32>} : memref<64x32xf32, #tpu.memory_space<vmem>>, vector<8x32xf32>,
    %c1_i32_44 = arith.constant 1 : i32
    %65 = arith.addi %c3_i32, %c1_i32_44 : i32
    %c8_i32_45 = arith.constant 8 : i32
    %66 = arith.cmpi slt, %65, %c8_i32_45 : i32
    %c1_i32_46 = arith.constant 1 : i32
    %67 = arith.addi %c3_i32, %c1_i32_46 : i32
    %c0_i32_47 = arith.constant 0 : i32
    %68 = arith.select %66, %67, %c0_i32_47 : i32
    %c8_i32_48 = arith.constant 8 : i32
    %69 = arith.muli %68, %c8_i32_48 : i32
    %70 = tpu.assume_multiple %69, 8 : i32
    %71 = arith.index_cast %70 : i32 to index
    %c0_49 = arith.constant 0 : index
    %72 = vector.load %arg13[%71, %c0_49] : memref<64x32xf32, #tpu.memory_space<vmem>>, vector<8x32xf32>
    %c4_i32 = arith.constant 4 : i32
    %cst_50 = arith.constant dense<0.000000e+00> : vector<8x32xf32>
    %73 = tpu.matmul %60, %1, %cst_50 {dimension_numbers = #tpu.dot_dimension_numbers<[1], [0], [0], [1], [0, 0, 1, 1], [], []>} : vector<8x32xf32>, vector<32x32xf32>, vector<8x32xf32> -> vector<8x32xf32>
    %74 = arith.addf %72, %73 : vector<8x32xf32>
    %75 = math.tanh %74 : vector<8x32xf32>
    %c8_i32_51 = arith.constant 8 : i32
    %76 = arith.muli %c4_i32, %c8_i32_51 : i32
    %77 = tpu.assume_multiple %76, 8 : i32
    %78 = arith.index_cast %77 : i32 to index
    %c0_52 = arith.constant 0 : index
    %79 = vector.load %arg13[%78, %c0_52] : memref<64x32xf32, #tpu.memory_space<vmem>>, vector<8x32xf32>
    tpu.vector_store %arg13[%78, %c0_52], %75 {strides = array<i32>} : memref<64x32xf32, #tpu.memory_space<vmem>>, vector<8x32xf32>,
    %c1_i32_53 = arith.constant 1 : i32
    %80 = arith.addi %c4_i32, %c1_i32_53 : i32
    %c8_i32_54 = arith.constant 8 : i32
    %81 = arith.cmpi slt, %80, %c8_i32_54 : i32
    %c1_i32_55 = arith.constant 1 : i32
    %82 = arith.addi %c4_i32, %c1_i32_55 : i32
    %c0_i32_56 = arith.constant 0 : i32
    %83 = arith.select %81, %82, %c0_i32_56 : i32
    %c8_i32_57 = arith.constant 8 : i32
    %84 = arith.muli %83, %c8_i32_57 : i32
    %85 = tpu.assume_multiple %84, 8 : i32
    %86 = arith.index_cast %85 : i32 to index
    %c0_58 = arith.constant 0 : index
    %87 = vector.load %arg13[%86, %c0_58] : memref<64x32xf32, #tpu.memory_space<vmem>>, vector<8x32xf32>
    %c5_i32 = arith.constant 5 : i32
    %cst_59 = arith.constant dense<0.000000e+00> : vector<8x32xf32>
    %88 = tpu.matmul %75, %1, %cst_59 {dimension_numbers = #tpu.dot_dimension_numbers<[1], [0], [0], [1], [0, 0, 1, 1], [], []>} : vector<8x32xf32>, vector<32x32xf32>, vector<8x32xf32> -> vector<8x32xf32>
    %89 = arith.addf %87, %88 : vector<8x32xf32>
    %90 = math.tanh %89 : vector<8x32xf32>
    %c8_i32_60 = arith.constant 8 : i32
    %91 = arith.muli %c5_i32, %c8_i32_60 : i32
    %92 = tpu.assume_multiple %91, 8 : i32
    %93 = arith.index_cast %92 : i32 to index
    %c0_61 = arith.constant 0 : index
    %94 = vector.load %arg13[%93, %c0_61] : memref<64x32xf32, #tpu.memory_space<vmem>>, vector<8x32xf32>
    tpu.vector_store %arg13[%93, %c0_61], %90 {strides = array<i32>} : memref<64x32xf32, #tpu.memory_space<vmem>>, vector<8x32xf32>,
    %c1_i32_62 = arith.constant 1 : i32
    %95 = arith.addi %c5_i32, %c1_i32_62 : i32
    %c8_i32_63 = arith.constant 8 : i32
    %96 = arith.cmpi slt, %95, %c8_i32_63 : i32
    %c1_i32_64 = arith.constant 1 : i32
    %97 = arith.addi %c5_i32, %c1_i32_64 : i32
    %c0_i32_65 = arith.constant 0 : i32
    %98 = arith.select %96, %97, %c0_i32_65 : i32
    %c8_i32_66 = arith.constant 8 : i32
    %99 = arith.muli %98, %c8_i32_66 : i32
    %100 = tpu.assume_multiple %99, 8 : i32
    %101 = arith.index_cast %100 : i32 to index
    %c0_67 = arith.constant 0 : index
    %102 = vector.load %arg13[%101, %c0_67] : memref<64x32xf32, #tpu.memory_space<vmem>>, vector<8x32xf32>
    %c6_i32 = arith.constant 6 : i32
    %cst_68 = arith.constant dense<0.000000e+00> : vector<8x32xf32>
    %103 = tpu.matmul %90, %1, %cst_68 {dimension_numbers = #tpu.dot_dimension_numbers<[1], [0], [0], [1], [0, 0, 1, 1], [], []>} : vector<8x32xf32>, vector<32x32xf32>, vector<8x32xf32> -> vector<8x32xf32>
    %104 = arith.addf %102, %103 : vector<8x32xf32>
    %105 = math.tanh %104 : vector<8x32xf32>
    %c8_i32_69 = arith.constant 8 : i32
    %106 = arith.muli %c6_i32, %c8_i32_69 : i32
    %107 = tpu.assume_multiple %106, 8 : i32
    %108 = arith.index_cast %107 : i32 to index
    %c0_70 = arith.constant 0 : index
    %109 = vector.load %arg13[%108, %c0_70] : memref<64x32xf32, #tpu.memory_space<vmem>>, vector<8x32xf32>
    tpu.vector_store %arg13[%108, %c0_70], %105 {strides = array<i32>} : memref<64x32xf32, #tpu.memory_space<vmem>>, vector<8x32xf32>,
    %c1_i32_71 = arith.constant 1 : i32
    %110 = arith.addi %c6_i32, %c1_i32_71 : i32
    %c8_i32_72 = arith.constant 8 : i32
    %111 = arith.cmpi slt, %110, %c8_i32_72 : i32
    %c1_i32_73 = arith.constant 1 : i32
    %112 = arith.addi %c6_i32, %c1_i32_73 : i32
    %c0_i32_74 = arith.constant 0 : i32
    %113 = arith.select %111, %112, %c0_i32_74 : i32
    %c8_i32_75 = arith.constant 8 : i32
    %114 = arith.muli %113, %c8_i32_75 : i32
    %115 = tpu.assume_multiple %114, 8 : i32
    %116 = arith.index_cast %115 : i32 to index
    %c0_76 = arith.constant 0 : index
    %117 = vector.load %arg13[%116, %c0_76] : memref<64x32xf32, #tpu.memory_space<vmem>>, vector<8x32xf32>
    %c7_i32 = arith.constant 7 : i32
    %cst_77 = arith.constant dense<0.000000e+00> : vector<8x32xf32>
    %118 = tpu.matmul %105, %1, %cst_77 {dimension_numbers = #tpu.dot_dimension_numbers<[1], [0], [0], [1], [0, 0, 1, 1], [], []>} : vector<8x32xf32>, vector<32x32xf32>, vector<8x32xf32> -> vector<8x32xf32>
    %119 = arith.addf %117, %118 : vector<8x32xf32>
    %120 = math.tanh %119 : vector<8x32xf32>
    %c8_i32_78 = arith.constant 8 : i32
    %121 = arith.muli %c7_i32, %c8_i32_78 : i32
    %122 = tpu.assume_multiple %121, 8 : i32
    %123 = arith.index_cast %122 : i32 to index
    %c0_79 = arith.constant 0 : index
    %124 = vector.load %arg13[%123, %c0_79] : memref<64x32xf32, #tpu.memory_space<vmem>>, vector<8x32xf32>
    tpu.vector_store %arg13[%123, %c0_79], %120 {strides = array<i32>} : memref<64x32xf32, #tpu.memory_space<vmem>>, vector<8x32xf32>,
    %c1_i32_80 = arith.constant 1 : i32
    %125 = arith.addi %c7_i32, %c1_i32_80 : i32
    %c8_i32_81 = arith.constant 8 : i32
    %126 = arith.cmpi slt, %125, %c8_i32_81 : i32
    %c1_i32_82 = arith.constant 1 : i32
    %127 = arith.addi %c7_i32, %c1_i32_82 : i32
    %c0_i32_83 = arith.constant 0 : i32
    %128 = arith.select %126, %127, %c0_i32_83 : i32
    %c8_i32_84 = arith.constant 8 : i32
    %129 = arith.muli %128, %c8_i32_84 : i32
    %130 = tpu.assume_multiple %129, 8 : i32
    %131 = arith.index_cast %130 : i32 to index
    %c0_85 = arith.constant 0 : index
    %132 = vector.load %arg13[%131, %c0_85] : memref<64x32xf32, #tpu.memory_space<vmem>>, vector<8x32xf32>
    %c8_i32_86 = arith.constant 8 : i32
    %c0_87 = arith.constant 0 : index
    %c0_88 = arith.constant 0 : index
    %133 = vector.load %arg13[%c0_87, %c0_88] : memref<64x32xf32, #tpu.memory_space<vmem>>, vector<64x32xf32>
    %c0_89 = arith.constant 0 : index
    %c0_90 = arith.constant 0 : index
    %134 = vector.load %arg6[%c0_89, %c0_90] : memref<32x32xf32, #tpu.memory_space<vmem>>, vector<32x32xf32>
    %c0_91 = arith.constant 0 : index
    %c0_92 = arith.constant 0 : index
    %135 = vector.load %arg7[%c0_91, %c0_92] : memref<1x32xf32, #tpu.memory_space<vmem>>, vector<1x32xf32>
    %cst_93 = arith.constant dense<0.000000e+00> : vector<64x32xf32>
    %136 = tpu.matmul %133, %134, %cst_93 {dimension_numbers = #tpu.dot_dimension_numbers<[1], [0], [0], [1], [0, 0, 1, 1], [], []>} : vector<64x32xf32>, vector<32x32xf32>, vector<64x32xf32> -> vector<64x32xf32>
    %137 = vector.broadcast %135 : vector<1x32xf32> to vector<64x32xf32>
    %138 = arith.addf %136, %137 : vector<64x32xf32>
    %139 = math.tanh %138 : vector<64x32xf32>
    %c0_94 = arith.constant 0 : index
    %c0_95 = arith.constant 0 : index
    %140 = vector.load %arg8[%c0_94, %c0_95] : memref<32x32xf32, #tpu.memory_space<vmem>>, vector<32x32xf32>
    %c0_96 = arith.constant 0 : index
    %c0_97 = arith.constant 0 : index
    %141 = vector.load %arg9[%c0_96, %c0_97] : memref<1x32xf32, #tpu.memory_space<vmem>>, vector<1x32xf32>
    %cst_98 = arith.constant dense<0.000000e+00> : vector<64x32xf32>
    %142 = tpu.matmul %139, %140, %cst_98 {dimension_numbers = #tpu.dot_dimension_numbers<[1], [0], [0], [1], [0, 0, 1, 1], [], []>} : vector<64x32xf32>, vector<32x32xf32>, vector<64x32xf32> -> vector<64x32xf32>
    %143 = vector.broadcast %141 : vector<1x32xf32> to vector<64x32xf32>
    %144 = arith.addf %142, %143 : vector<64x32xf32>
    %145 = math.tanh %144 : vector<64x32xf32>
    %c0_99 = arith.constant 0 : index
    %c0_100 = arith.constant 0 : index
    %146 = vector.load %arg10[%c0_99, %c0_100] : memref<32x128xf32, #tpu.memory_space<vmem>>, vector<32x128xf32>
    %c0_101 = arith.constant 0 : index
    %c0_102 = arith.constant 0 : index
    %147 = vector.load %arg11[%c0_101, %c0_102] : memref<1x128xf32, #tpu.memory_space<vmem>>, vector<1x128xf32>
    %cst_103 = arith.constant dense<0.000000e+00> : vector<64x128xf32>
    %148 = tpu.matmul %145, %146, %cst_103 {dimension_numbers = #tpu.dot_dimension_numbers<[1], [0], [0], [1], [0, 0, 1, 1], [], []>} : vector<64x32xf32>, vector<32x128xf32>, vector<64x128xf32> -> vector<64x128xf32>
    %149 = vector.broadcast %147 : vector<1x128xf32> to vector<64x128xf32>
    %150 = arith.addf %148, %149 : vector<64x128xf32>
    %c0_104 = arith.constant 0 : index
    %c0_105 = arith.constant 0 : index
    %c0_106 = arith.constant 0 : index
    %151 = vector.load %arg12[%c0_104, %c0_105, %c0_106] : memref<1x64x128xf32, #tpu.memory_space<vmem>>, vector<1x64x128xf32>
    %152 = vector.shape_cast %151 : vector<1x64x128xf32> to vector<64x128xf32>
    %153 = vector.shape_cast %150 : vector<64x128xf32> to vector<1x64x128xf32>
    tpu.vector_store %arg12[%c0_104, %c0_105, %c0_106], %153 {strides = array<i32>} : memref<1x64x128xf32, #tpu.memory_space<vmem>>, vector<1x64x128xf32>,
    return
  }
  func.func @transform_0(%arg0: i32) -> (i32, i32, i32) {
    %c0_i32 = arith.constant 0 : i32
    %c0_i32_0 = arith.constant 0 : i32
    %c0_i32_1 = arith.constant 0 : i32
    return %arg0, %c0_i32, %c0_i32_0 : i32, i32, i32
  }
  func.func @transform_1(%arg0: i32) -> (i32, i32) {
    %c0_i32 = arith.constant 0 : i32
    %c0_i32_0 = arith.constant 0 : i32
    %c0_i32_1 = arith.constant 0 : i32
    return %c0_i32, %c0_i32_0 : i32, i32
  }
  func.func @transform_2(%arg0: i32) -> (i32, i32) {
    %c0_i32 = arith.constant 0 : i32
    %c0_i32_0 = arith.constant 0 : i32
    %c0_i32_1 = arith.constant 0 : i32
    return %c0_i32, %c0_i32_0 : i32, i32
  }
  func.func @transform_3(%arg0: i32) -> (i32, i32) {
    %c0_i32 = arith.constant 0 : i32
    %c0_i32_0 = arith.constant 0 : i32
    %c0_i32_1 = arith.constant 0 : i32
    return %c0_i32, %c0_i32_0 : i32, i32
  }
  func.func @transform_4(%arg0: i32) -> (i32, i32) {
    %c0_i32 = arith.constant 0 : i32
    %c0_i32_0 = arith.constant 0 : i32
    %c0_i32_1 = arith.constant 0 : i32
    return %c0_i32, %c0_i32_0 : i32, i32
  }
  func.func @transform_5(%arg0: i32) -> (i32, i32) {
    %c0_i32 = arith.constant 0 : i32
    %c0_i32_0 = arith.constant 0 : i32
    %c0_i32_1 = arith.constant 0 : i32
    return %c0_i32, %c0_i32_0 : i32, i32
  }
  func.func @transform_6(%arg0: i32) -> (i32, i32) {
    %c0_i32 = arith.constant 0 : i32
    %c0_i32_0 = arith.constant 0 : i32
    %c0_i32_1 = arith.constant 0 : i32
    return %c0_i32, %c0_i32_0 : i32, i32
  }
  func.func @transform_7(%arg0: i32) -> (i32, i32) {
    %c0_i32 = arith.constant 0 : i32
    %c0_i32_0 = arith.constant 0 : i32
    %c0_i32_1 = arith.constant 0 : i32
    return %c0_i32, %c0_i32_0 : i32, i32
  }
  func.func @transform_8(%arg0: i32) -> (i32, i32) {
    %c0_i32 = arith.constant 0 : i32
    %c0_i32_0 = arith.constant 0 : i32
    %c0_i32_1 = arith.constant 0 : i32
    return %c0_i32, %c0_i32_0 : i32, i32
  }
  func.func @transform_9(%arg0: i32) -> (i32, i32) {
    %c0_i32 = arith.constant 0 : i32
    %c0_i32_0 = arith.constant 0 : i32
    %c0_i32_1 = arith.constant 0 : i32
    return %c0_i32, %c0_i32_0 : i32, i32
  }
  func.func @transform_10(%arg0: i32) -> (i32, i32) {
    %c0_i32 = arith.constant 0 : i32
    %c0_i32_0 = arith.constant 0 : i32
    %c0_i32_1 = arith.constant 0 : i32
    return %c0_i32, %c0_i32_0 : i32, i32
  }
  func.func @transform_11(%arg0: i32) -> (i32, i32, i32) {
    %c0_i32 = arith.constant 0 : i32
    %c0_i32_0 = arith.constant 0 : i32
    %c0_i32_1 = arith.constant 0 : i32
    return %arg0, %c0_i32, %c0_i32_0 : i32, i32, i32
  }
}

</mosaic_0001>

<bundles_post_ra>
// kernel: sequence_forecaster_forward.1
= control target key start
LH: loop header
LB: loop body
LE: loop exit
PB: predicated region body
PF: predicated region fallthrough
CT: control target
= control target key end

     0   :  { %vm82_vm0 = vcmask 1043456   ;;  %vm57_vm1 = vcmask 31744   ;;  %vm127_vm2 = vcmask 261120   ;;  %v707_v13 = vmov -1.0   ;;  %s958_s1 = inlined_call_operand.vmem [shape: f32[4,32], index: 1, kind: input, shape index: {}]   ;;  %s959_s0 = inlined_call_operand.vmem [shape: f32[1,64,4], index: 0, kind: input, shape index: {}]   ;;  %s960_s3 = inlined_call_operand.vmem [shape: f32[32,32], index: 3, kind: input, shape index: {}]   ;;  %s961_s2 = inlined_call_operand.vmem [shape: f32[1,32], index: 2, kind: input, shape index: {}]   ;;  %s962_s4 = inlined_call_operand.vmem [shape: f32[1,32], index: 4, kind: input, shape index: {}]   ;;  %s963_s5 = inlined_call_operand.vmem [shape: f32[32,32], index: 5, kind: input, shape index: {}]   ;;  %s964_s6 = inlined_call_operand.vmem [shape: f32[1,32], index: 6, kind: input, shape index: {}]   ;;  %s965_s7 = inlined_call_operand.vmem [shape: f32[32,32], index: 7, kind: input, shape index: {}]   ;;  %s966_s8 = inlined_call_operand.vmem [shape: f32[1,32], index: 8, kind: input, shape index: {}]   ;;  %s967_s9 = inlined_call_operand.vmem [shape: f32[32,128], index: 9, kind: input, shape index: {}]   ;;  %s968_s10 = inlined_call_operand.vmem [shape: f32[1,128], index: 10, kind: input, shape index: {}]   ;;  %s969_s11 = inlined_call_operand.vmem [shape: f32[1,64,128], index: 11, kind: output, shape index: {}]  }
   0x1   :  { %v38_v0 = vld [vmem:[%s958_s1] sm:$0xf]  ;;  %v42_v2 = vld [vmem:[%s960_s3 + $0x18] sm:$0xff]  ;;  %v41_v3 = vld [vmem:[%s960_s3 + $0x10] sm:$0xff] }
   0x2   :  { %v46_v1 = vld [vmem:[%s959_s0] sm:$0xff]  ;;  %614 = vmatpush.msk.msra.mxu0 %vm82_vm0, %v38_v0  ;;  %208 = vmatpush.msra.mxu3 %v42_v2  ;;  %v40_v4 = vld [vmem:[%s960_s3 + $0x8] sm:$0xff]  ;;  %v48_v6 = vld [vmem:[%s959_s0 + $0x10] sm:$0xff] }
   0x3   :  { %615 = vmatmul.msk.f32.vlgmr.msra.gmra.mxu0 %vm57_vm1, %v46_v1  ;;  %236 = vmatpush.msra.mxu1 %v42_v2  ;;  %v47_v5 = vld [vmem:[%s959_s0 + $0x8] sm:$0xff]  ;;  %v39_v7 = vld [vmem:[%s960_s3] sm:$0xff]  ;;  %v49_v8 = vld [vmem:[%s959_s0 + $0x18] sm:$0xff] }
   0x4   :  { %152 = vmatpush.msrb.mxu0 %v42_v2  ;;  %209 = vmatpush.msra.mxu3 %v41_v3  ;;  %v50_v9 = vld [vmem:[%s959_s0 + $0x20] sm:$0xff]  ;;  %v51_v10 = vld [vmem:[%s959_s0 + $0x28] sm:$0xff]  ;;  %v52_v11 = vld [vmem:[%s959_s0 + $0x30] sm:$0xff] }
   0x5   :  { %237 = vmatpush.msra.mxu1 %v41_v3  ;;  %264 = vmatpush.msra.mxu2 %v42_v2  ;;  %v53_v12 = vld [vmem:[%s959_s0 + $0x38] sm:$0xff]  ;;  %v43_v14 = vld [vmem:[%s961_s2] sm:$0x1]  ;;  %v369_v51 = vld [vmem:[%s963_s5 + $0x10] sm:$0xff] }
   0x6   :  { %153 = vmatpush.msrb.mxu0 %v41_v3  ;;  %210 = vmatpush.msra.mxu3 %v40_v4  ;;  %v44_v15 = vld [vmem:[%s962_s4] sm:$0x1]  ;;  %v370_v50 = vld [vmem:[%s963_s5 + $0x18] sm:$0xff]  ;;  %v368_v52 = vld [vmem:[%s963_s5 + $0x8] sm:$0xff] }
   0x7   :  { %238 = vmatpush.msra.mxu1 %v40_v4  ;;  %265 = vmatpush.msra.mxu2 %v41_v3  ;;  %v45_v16 = vadd.f32 %v44_v15, %v43_v14  ;;  %v367_v53 = vld [vmem:[%s963_s5] sm:$0xff]  ;;  %v451_v63 = vld [vmem:[%s965_s7 + $0x18] sm:$0xff]  ;;  %v450_v0 = vld [vmem:[%s965_s7 + $0x10] sm:$0xff] }
   0x8   :  { %154 = vmatpush.msrb.mxu0 %v40_v4  ;;  %211 = vmatpush.msra.mxu3 %v39_v7  ;;  %v449_v1 = vld [vmem:[%s965_s7 + $0x8] sm:$0xff] }
   0x9   :  { %266 = vmatpush.msra.mxu2 %v40_v4  ;;  %239 = vmatpush.msra.mxu1 %v39_v7  ;;  %v55_v17 = vperm.slane %v45_v16, 0 }
   0xa   :  { %155 = vmatpush.msrb.mxu0 %v39_v7  ;;  %292 = vmatpush.msrb.mxu3 %v42_v2 }
   0xb   :  { %616 = vmatmul.msk.f32.gmra.mxu0 %vm57_vm1, %v47_v5  ;;  %267 = vmatpush.msra.mxu2 %v39_v7 }
   0xc   :  { %180 = vmatpush.msra.mxu0 %v42_v2  ;;  %320 = vmatpush.msrb.mxu1 %v42_v2 }
   0xd   :  { %293 = vmatpush.msrb.mxu3 %v41_v3  ;;  %348 = vmatpush.msrb.mxu2 %v42_v2  ;;  %v448_v2 = vld [vmem:[%s965_s7] sm:$0xff] }
   0xe   :  { %181 = vmatpush.msra.mxu0 %v41_v3  ;;  %321 = vmatpush.msrb.mxu1 %v41_v3 }
   0xf   :  { %294 = vmatpush.msrb.mxu3 %v40_v4  ;;  %349 = vmatpush.msrb.mxu2 %v41_v3 }
  0x10   :  { %182 = vmatpush.msra.mxu0 %v40_v4  ;;  %322 = vmatpush.msrb.mxu1 %v40_v4 }
  0x11   :  { %295 = vmatpush.msrb.mxu3 %v39_v7  ;;  %350 = vmatpush.msrb.mxu2 %v40_v4 }
  0x12   :  { %183 = vmatpush.msra.mxu0 %v39_v7  ;;  %323 = vmatpush.msrb.mxu1 %v39_v7 }
  0x13   :  { %617 = vmatmul.msk.f32.gmra.mxu0 %vm57_vm1, %v48_v6  ;;  %351 = vmatpush.msrb.mxu2 %v39_v7  ;;  %v872_v6 = vld [vmem:[%s964_s6] ss:$0 sm:$0xff] }
  0x1b   :  { %618 = vmatmul.msk.f32.gmra.mxu0 %vm57_vm1, %v49_v8 }
  0x23   :  { %619 = vmatmul.msk.f32.gmra.mxu0 %vm57_vm1, %v50_v9 }
  0x2b   :  { %620 = vmatmul.msk.f32.gmra.mxu0 %vm57_vm1, %v51_v10 }
  0x33   :  { %621 = vmatmul.msk.f32.gmra.mxu0 %vm57_vm1, %v52_v11 }
  0x3b   :  { %622 = vmatmul.msk.f32.gmra.mxu0 %vm57_vm1, %v53_v12 }
  0x43   :  { %623 = vmatmul.msk.f32.vlgmr.msrb.gmra.mxu0 %vm127_vm2, %v707_v13 }
  0x80   :  { %v103_v18 = vpop.f32.mrf.mxu0 }
  0x81   :  { %v104_v19 = vadd.f32 %v103_v18, %v55_v17 }
  0x83   :  { %128 = vst.msk [vmem:[#allocation2] sm:$0xff] %vm127_vm2, %v104_v19 }
  0x88   :  { %v106_v20 = vpop.f32.mrf.mxu0 }
  0x89   :  { %v107_v21 = vadd.f32 %v106_v20, %v55_v17 }
  0x8a   :  { %v136_v34 = vld [vmem:[#allocation2] sm:$0xff] }
  0x8b   :  { %129 = vst.msk [vmem:[#allocation2 + $0x8] sm:$0xff] %vm127_vm2, %v107_v21 }
  0x90   :  { %v109_v22 = vpop.f32.mrf.mxu0 }
  0x91   :  { %v110_v23 = vadd.f32 %v109_v22, %v55_v17 }
  0x92   :  { %v164_v38 = vld [vmem:[#allocation2 + $0x8] sm:$0xff] }
  0x93   :  { %130 = vst.msk [vmem:[#allocation2 + $0x10] sm:$0xff] %vm127_vm2, %v110_v23 }
  0x98   :  { %v112_v24 = vpop.f32.mrf.mxu0 }
  0x99   :  { %v113_v25 = vadd.f32 %v112_v24, %v55_v17  ;;  %v532_v24 = vld [vmem:[%s967_s9 + $0x18] sm:$0xff] }
  0x9a   :  { %v192_v42 = vld [vmem:[#allocation2 + $0x10] sm:$0xff] }
  0x9b   :  { %131 = vst.msk [vmem:[#allocation2 + $0x18] sm:$0xff] %vm127_vm2, %v113_v25  ;;  %v531_v25 = vld [vmem:[%s967_s9 + $0x10] sm:$0xff] }
  0xa0   :  { %v115_v26 = vpop.f32.mrf.mxu0 }
  0xa1   :  { %v116_v27 = vadd.f32 %v115_v26, %v55_v17  ;;  %v530_v26 = vld [vmem:[%s967_s9 + $0x8] sm:$0xff] }
  0xa2   :  { %v220_v46 = vld [vmem:[#allocation2 + $0x18] sm:$0xff] }
  0xa3   :  { %132 = vst.msk [vmem:[#allocation2 + $0x20] sm:$0xff] %vm127_vm2, %v116_v27  ;;  %v529_v27 = vld [vmem:[%s967_s9] sm:$0xff] }
  0xa8   :  { %v118_v28 = vpop.f32.mrf.mxu0 }
  0xa9   :  { %v119_v29 = vadd.f32 %v118_v28, %v55_v17 }
  0xaa   :  { %v248_v54 = vld [vmem:[#allocation2 + $0x20] sm:$0xff] }
  0xab   :  { %133 = vst.msk [vmem:[#allocation2 + $0x28] sm:$0xff] %vm127_vm2, %v119_v29 }
  0xb0   :  { %v121_v30 = vpop.f32.mrf.mxu0 }
  0xb1   :  { %v122_v31 = vadd.f32 %v121_v30, %v55_v17 }
  0xb2   :  { %v276_v3 = vld [vmem:[#allocation2 + $0x28] sm:$0xff] }
  0xb3   :  { %134 = vst.msk [vmem:[#allocation2 + $0x30] sm:$0xff] %vm127_vm2, %v122_v31  ;;  %v902_v31 = vld [vmem:[%s966_s8] ss:$0 sm:$0xff] }
  0xb8   :  { %v124_v32 = vpop.f32.mrf.mxu0 }
  0xb9   :  { %v125_v33 = vadd.f32 %v124_v32, %v55_v17 }
  0xba   :  { %v304_v28 = vld [vmem:[#allocation2 + $0x30] sm:$0xff] }
  0xbb   :  { %135 = vst.msk [vmem:[#allocation2 + $0x38] sm:$0xff] %vm127_vm2, %v125_v33 }
  0xc0   :  { %v157_v35 = vpop.f32.mrf.mxu0 }
  0xc1   :  { %v160_v36 = vadd.f32 %v157_v35, %v136_v34 }
  0xc3   :  { %659 = vtanh.f32 %v160_v36 }
  0xc9   :  { %v660_v37 = vpop.eup %659 }
  0xca   :  { %162 = vst.msk [vmem:[#allocation2] sm:$0xff] %vm127_vm2, %v660_v37  ;;  %624 = vmatmul.msk.f32.vlgmr.msra.gmra.mxu0 %vm127_vm2, %v660_v37 }
  0xd1   :  { %v359_v58 = vld [vmem:[#allocation2] sm:$0xff] }
 0x147   :  { %v185_v39 = vpop.f32.mrf.mxu0 }
 0x148   :  { %v188_v40 = vadd.f32 %v185_v39, %v164_v38 }
 0x14a   :  { %661 = vtanh.f32 %v188_v40 }
 0x150   :  { %v662_v41 = vpop.eup %661 }
 0x151   :  { %190 = vst.msk [vmem:[#allocation2 + $0x8] sm:$0xff] %vm127_vm2, %v662_v41  ;;  %625 = vmatmul.msk.f32.vlgmr.msra.gmra.mxu3 %vm127_vm2, %v662_v41 }
 0x152   :  { %411 = vmatpush.msra.mxu3 %v370_v50 }
 0x154   :  { %412 = vmatpush.msra.mxu3 %v369_v51 }
 0x156   :  { %413 = vmatpush.msra.mxu3 %v368_v52  ;;  %v332_v52 = vld [vmem:[#allocation2 + $0x38] sm:$0xff] }
 0x158   :  { %414 = vmatpush.msra.mxu3 %v367_v53  ;;  %v360_v59 = vld [vmem:[#allocation2 + $0x8] sm:$0xff] }
 0x1d4   :  { %v213_v43 = vpop.f32.mrf.mxu3 }
 0x1d5   :  { %v216_v44 = vadd.f32 %v213_v43, %v192_v42 }
 0x1d7   :  { %663 = vtanh.f32 %v216_v44 }
 0x1dd   :  { %v664_v45 = vpop.eup %663 }
 0x1de   :  { %218 = vst.msk [vmem:[#allocation2 + $0x10] sm:$0xff] %vm127_vm2, %v664_v45  ;;  %626 = vmatmul.msk.f32.vlgmr.msra.gmra.mxu1 %vm127_vm2, %v664_v45 }
 0x1df   :  { %492 = vmatpush.msra.mxu1 %v451_v63 }
 0x1e1   :  { %493 = vmatpush.msra.mxu1 %v450_v0 }
 0x1e3   :  { %494 = vmatpush.msra.mxu1 %v449_v1 }
 0x1e5   :  { %v361_v60 = vld [vmem:[#allocation2 + $0x10] sm:$0xff]  ;;  %495 = vmatpush.msra.mxu1 %v448_v2 }
 0x25b   :  { %v241_v47 = vpop.f32.mrf.mxu1 }
 0x25c   :  { %v244_v48 = vadd.f32 %v241_v47, %v220_v46 }
 0x25e   :  { %665 = vtanh.f32 %v244_v48 }
 0x264   :  { %v666_v49 = vpop.eup %665 }
 0x265   :  { %246 = vst.msk [vmem:[#allocation2 + $0x18] sm:$0xff] %vm127_vm2, %v666_v49  ;;  %627 = vmatmul.msk.f32.vlgmr.msra.gmra.mxu2 %vm127_vm2, %v666_v49 }
 0x266   :  { %573 = vmatpush.msra.mxu2 %v532_v24 }
 0x268   :  { %574 = vmatpush.msra.mxu2 %v531_v25 }
 0x26a   :  { %575 = vmatpush.msra.mxu2 %v530_v26 }
 0x26c   :  { %v362_v61 = vld [vmem:[#allocation2 + $0x18] sm:$0xff]  ;;  %576 = vmatpush.msra.mxu2 %v529_v27 }
 0x2e8   :  { %v269_v55 = vpop.f32.mrf.mxu2 }
 0x2e9   :  { %v272_v56 = vadd.f32 %v269_v55, %v248_v54  ;;  %v658_v55 = vld [vmem:[%s968_s10] ss:$0 sm:$0xff] }
 0x2eb   :  { %667 = vtanh.f32 %v272_v56 }
 0x2f1   :  { %v668_v57 = vpop.eup %667 }
 0x2f2   :  { %274 = vst.msk [vmem:[#allocation2 + $0x20] sm:$0xff] %vm127_vm2, %v668_v57  ;;  %628 = vmatmul.msk.f32.vlgmr.msrb.gmra.mxu3 %vm127_vm2, %v668_v57 }
 0x2f9   :  { %v363_v62 = vld [vmem:[#allocation2 + $0x20] sm:$0xff] }
 0x2fa   :  { %631 = vmatmul.msk.f32.vlgmr.msra.gmra.mxu3 %vm127_vm2, %v359_v58 }
 0x302   :  { %632 = vmatmul.msk.f32.gmra.mxu3 %vm127_vm2, %v360_v59 }
 0x30a   :  { %633 = vmatmul.msk.f32.gmra.mxu3 %vm127_vm2, %v361_v60 }
 0x312   :  { %634 = vmatmul.msk.f32.gmra.mxu3 %vm127_vm2, %v362_v61 }
 0x31a   :  { %635 = vmatmul.msk.f32.gmra.mxu3 %vm127_vm2, %v363_v62 }
 0x375   :  { %v297_v4 = vpop.f32.mrf.mxu3 }
 0x376   :  { %v300_v5 = vadd.f32 %v297_v4, %v276_v3 }
 0x378   :  { %669 = vtanh.f32 %v300_v5 }
 0x37d   :  { %v416_v7 = vpop.f32.mrf.mxu3 }
 0x37e   :  { %v670_v8 = vpop.eup %669  ;;  %v417_v9 = vadd.f32 %v872_v6, %v416_v7 }
 0x37f   :  { %302 = vst.msk [vmem:[#allocation2 + $0x28] sm:$0xff] %vm127_vm2, %v670_v8  ;;  %629 = vmatmul.msk.f32.vlgmr.msrb.gmra.mxu1 %vm127_vm2, %v670_v8 }
 0x380   :  { %671 = vtanh.f32 %v417_v9 }
 0x385   :  { %v419_v10 = vpop.f32.mrf.mxu3 }
 0x386   :  { %v672_v11 = vpop.eup %671  ;;  %v420_v12 = vadd.f32 %v872_v6, %v419_v10  ;;  %v364_v13 = vld [vmem:[#allocation2 + $0x28] sm:$0xff] }
 0x387   :  { %636 = vmatmul.msk.f32.gmra.mxu3 %vm127_vm2, %v364_v13  ;;  %639 = vmatmul.msk.f32.vlgmr.msra.gmra.mxu1 %vm127_vm2, %v672_v11 }
 0x388   :  { %673 = vtanh.f32 %v420_v12 }
 0x38d   :  { %v422_v14 = vpop.f32.mrf.mxu3 }
 0x38e   :  { %v674_v15 = vpop.eup %673  ;;  %v423_v16 = vadd.f32 %v872_v6, %v422_v14 }
 0x38f   :  { %640 = vmatmul.msk.f32.gmra.mxu1 %vm127_vm2, %v674_v15 }
 0x390   :  { %675 = vtanh.f32 %v423_v16 }
 0x395   :  { %v425_v17 = vpop.f32.mrf.mxu3 }
 0x396   :  { %v676_v18 = vpop.eup %675  ;;  %v426_v19 = vadd.f32 %v872_v6, %v425_v17 }
 0x397   :  { %641 = vmatmul.msk.f32.gmra.mxu1 %vm127_vm2, %v676_v18 }
 0x398   :  { %677 = vtanh.f32 %v426_v19 }
 0x39d   :  { %v428_v20 = vpop.f32.mrf.mxu3 }
 0x39e   :  { %v678_v21 = vpop.eup %677  ;;  %v429_v22 = vadd.f32 %v872_v6, %v428_v20 }
 0x39f   :  { %642 = vmatmul.msk.f32.gmra.mxu1 %vm127_vm2, %v678_v21 }
 0x3a0   :  { %679 = vtanh.f32 %v429_v22 }
 0x3a6   :  { %v680_v23 = vpop.eup %679 }
 0x3a7   :  { %643 = vmatmul.msk.f32.gmra.mxu1 %vm127_vm2, %v680_v23 }
 0x3fc   :  { %v325_v29 = vpop.f32.mrf.mxu1 }
 0x3fd   :  { %v328_v30 = vadd.f32 %v325_v29, %v304_v28 }
 0x3ff   :  { %681 = vtanh.f32 %v328_v30 }
 0x404   :  { %v497_v32 = vpop.f32.mrf.mxu1 }
 0x405   :  { %v682_v33 = vpop.eup %681  ;;  %v498_v34 = vadd.f32 %v902_v31, %v497_v32 }
 0x406   :  { %330 = vst.msk [vmem:[#allocation2 + $0x30] sm:$0xff] %vm127_vm2, %v682_v33  ;;  %630 = vmatmul.msk.f32.vlgmr.msrb.gmra.mxu2 %vm127_vm2, %v682_v33 }
 0x407   :  { %683 = vtanh.f32 %v498_v34 }
 0x40a   :  { %v431_v35 = vpop.f32.mrf.mxu3 }
 0x40b   :  { %v432_v36 = vadd.f32 %v872_v6, %v431_v35 }
 0x40c   :  { %v500_v37 = vpop.f32.mrf.mxu1 }
 0x40d   :  { %v684_v38 = vpop.eup %683  ;;  %685 = vtanh.f32 %v432_v36  ;;  %v501_v39 = vadd.f32 %v902_v31, %v500_v37  ;;  %v365_v40 = vld [vmem:[#allocation2 + $0x30] sm:$0xff] }
 0x40e   :  { %637 = vmatmul.msk.f32.gmra.mxu3 %vm127_vm2, %v365_v40  ;;  %647 = vmatmul.msk.f32.vlgmr.msra.gmra.mxu2 %vm127_vm2, %v684_v38 }
 0x40f   :  { %687 = vtanh.f32 %v501_v39 }
 0x413   :  { %v686_v41 = vpop.eup %685 }
 0x414   :  { %v503_v42 = vpop.f32.mrf.mxu1  ;;  %644 = vmatmul.msk.f32.gmra.mxu1 %vm127_vm2, %v686_v41 }
 0x415   :  { %v688_v43 = vpop.eup %687  ;;  %v504_v44 = vadd.f32 %v902_v31, %v503_v42 }
 0x416   :  { %648 = vmatmul.msk.f32.gmra.mxu2 %vm127_vm2, %v688_v43 }
 0x417   :  { %689 = vtanh.f32 %v504_v44 }
 0x41c   :  { %v506_v45 = vpop.f32.mrf.mxu1 }
 0x41d   :  { %v690_v46 = vpop.eup %689  ;;  %v507_v47 = vadd.f32 %v902_v31, %v506_v45 }
 0x41e   :  { %649 = vmatmul.msk.f32.gmra.mxu2 %vm127_vm2, %v690_v46 }
 0x41f   :  { %691 = vtanh.f32 %v507_v47 }
 0x424   :  { %v509_v48 = vpop.f32.mrf.mxu1 }
 0x425   :  { %v692_v49 = vpop.eup %691  ;;  %v510_v50 = vadd.f32 %v902_v31, %v509_v48 }
 0x426   :  { %650 = vmatmul.msk.f32.gmra.mxu2 %vm127_vm2, %v692_v49 }
 0x427   :  { %693 = vtanh.f32 %v510_v50 }
 0x42d   :  { %v694_v51 = vpop.eup %693 }
 0x42e   :  { %651 = vmatmul.msk.f32.gmra.mxu2 %vm127_vm2, %v694_v51 }
 0x489   :  { %v353_v53 = vpop.f32.mrf.mxu2 }
 0x48a   :  { %v356_v54 = vadd.f32 %v353_v53, %v332_v52 }
 0x48c   :  { %695 = vtanh.f32 %v356_v54 }
 0x491   :  { %v434_v56 = vpop.f32.mrf.mxu3  ;;  %v512_v57 = vpop.f32.mrf.mxu1 }
 0x492   :  { %v696_v58 = vpop.eup %695  ;;  %v435_v59 = vadd.f32 %v872_v6, %v434_v56  ;;  %v513_v60 = vadd.f32 %v902_v31, %v512_v57  ;;  %v578_v61 = vpop.f32.mrf.mxu2 }
 0x493   :  { %358 = vst.msk [vmem:[#allocation2 + $0x38] sm:$0xff] %vm127_vm2, %v696_v58  ;;  %v579_v62 = vadd.f32 %v658_v55, %v578_v61 }
 0x494   :  { %697 = vtanh.f32 %v435_v59 }
 0x495   :  { %699 = vtanh.f32 %v513_v60  ;;  %602 = vst [vmem:[%s969_s11] sm:$0xff] %v579_v62 }
 0x49a   :  { %v698_v63 = vpop.eup %697  ;;  %v581_v0 = vpop.f32.mrf.mxu2  ;;  %v366_v1 = vld [vmem:[#allocation2 + $0x38] sm:$0xff] }
 0x49b   :  { %v700_v2 = vpop.eup %699  ;;  %v582_v3 = vadd.f32 %v658_v55, %v581_v0  ;;  %638 = vmatmul.msk.f32.gmra.mxu3 %vm127_vm2, %v366_v1  ;;  %645 = vmatmul.msk.f32.gmra.mxu1 %vm127_vm2, %v698_v63 }
 0x49c   :  { %652 = vmatmul.msk.f32.gmra.mxu2 %vm127_vm2, %v700_v2 }
 0x49d   :  { %603 = vst [vmem:[%s969_s11 + $0x8] sm:$0xff] %v582_v3 }
 0x4a2   :  { %v584_v4 = vpop.f32.mrf.mxu2 }
 0x4a3   :  { %v585_v5 = vadd.f32 %v658_v55, %v584_v4 }
 0x4a5   :  { %604 = vst [vmem:[%s969_s11 + $0x10] sm:$0xff] %v585_v5 }
 0x4aa   :  { %v587_v7 = vpop.f32.mrf.mxu2 }
 0x4ab   :  { %v588_v8 = vadd.f32 %v658_v55, %v587_v7 }
 0x4ad   :  { %605 = vst [vmem:[%s969_s11 + $0x18] sm:$0xff] %v588_v8 }
 0x4b2   :  { %v590_v9 = vpop.f32.mrf.mxu2 }
 0x4b3   :  { %v591_v10 = vadd.f32 %v658_v55, %v590_v9 }
 0x4b5   :  { %606 = vst [vmem:[%s969_s11 + $0x20] sm:$0xff] %v591_v10 }
 0x518   :  { %v515_v11 = vpop.f32.mrf.mxu1 }
 0x519   :  { %v516_v12 = vadd.f32 %v902_v31, %v515_v11 }
 0x51b   :  { %701 = vtanh.f32 %v516_v12 }
 0x51e   :  { %v437_v13 = vpop.f32.mrf.mxu3 }
 0x51f   :  { %v438_v14 = vadd.f32 %v872_v6, %v437_v13  ;;  %v593_v15 = vpop.f32.mrf.mxu2 }
 0x520   :  { %v594_v16 = vadd.f32 %v658_v55, %v593_v15 }
 0x521   :  { %v702_v17 = vpop.eup %701  ;;  %703 = vtanh.f32 %v438_v14 }
 0x522   :  { %607 = vst [vmem:[%s969_s11 + $0x28] sm:$0xff] %v594_v16  ;;  %653 = vmatmul.msk.f32.gmra.mxu2 %vm127_vm2, %v702_v17 }
 0x527   :  { %v704_v18 = vpop.eup %703 }
 0x528   :  { %646 = vmatmul.msk.f32.gmra.mxu1 %vm127_vm2, %v704_v18 }
 0x5a5   :  { %v518_v19 = vpop.f32.mrf.mxu1  ;;  %v596_v20 = vpop.f32.mrf.mxu2 }
 0x5a6   :  { %v519_v21 = vadd.f32 %v902_v31, %v518_v19  ;;  %v597_v22 = vadd.f32 %v658_v55, %v596_v20 }
 0x5a8   :  { %705 = vtanh.f32 %v519_v21  ;;  %608 = vst [vmem:[%s969_s11 + $0x30] sm:$0xff] %v597_v22 }
 0x5ae   :  { %v706_v6 = vpop.eup %705 }
 0x5af   :  { %654 = vmatmul.msk.f32.gmra.mxu2 %vm127_vm2, %v706_v6 }
 0x632   :  { %v599_v23 = vpop.f32.mrf.mxu2 }
 0x633   :  { %v600_v24 = vadd.f32 %v658_v55, %v599_v23 }
 0x635   :  { %609 = vst [vmem:[%s969_s11 + $0x38] sm:$0xff] %v600_v24 }

</bundles_post_ra>
